<compile_context>
chip_gen: v6e
topology: v6e:2x2x1
jax: 0.10.0
libtpu: 0.0.40
codegen_flags: <defaults>
</compile_context>

<pallas_src>
import functools

import numpy as np
import jax
import jax.numpy as jnp
from jax.experimental import pallas as pl
from jax.experimental.pallas import tpu as pltpu

_LOG_FLOOR = -1e30  # finite stand-in for log(0); conj->~0 / dis->~1 semantics kept


# ----------------------------------------------------------------------------
# Fused kernel: binarize -> union2 (MXU) -> union3 (fused log) -> LR (one dot)
# ----------------------------------------------------------------------------
def _net_fused_kernel(x_disc_ref, x_cont_ref, clf_ref,
                      lc2t_ref, ld2t_ref, wc3_ref, wd3_ref,
                      wlrt_ref, blr_ref, out_ref, *, n_bin):
    # ---- BinarizeLayer -----------------------------------------------------
    x_disc = x_disc_ref[...]                              # (TB, DISC)
    x_cont = x_cont_ref[...]                              # (TB, CONT)
    # k-major tiling of the continuous features: col k*C + c == x_cont[:, c]
    xck = jnp.concatenate([x_cont] * n_bin, axis=1)       # (TB, K*C)
    pos = jnp.where(xck > clf_ref[...], 1.0, 0.0)         # (TB, K*C)
    negp = 1.0 - pos
    bin_act = jnp.concatenate([x_disc, pos, negp], axis=1)   # (TB, D_bin)
    binc = 1.0 - bin_act

    # ---- UnionLayer 2 (binary inputs -> matmul against log(1-W)) ------------
    sc2 = jnp.dot(binc, lc2t_ref[...], preferred_element_type=jnp.float32)
    sd2 = jnp.dot(bin_act, ld2t_ref[...], preferred_element_type=jnp.float32)
    conj2 = jnp.clip(pl.reciprocal(1.0 - sc2, approx=True), 0.0, 1.0)  # (TB, N2)
    dis2 = jnp.clip(1.0 - pl.reciprocal(1.0 - sd2, approx=True), 0.0, 1.0)

    # ---- UnionLayer 3 (use_not=True, continuous -> single fused log/reduce) -
    c2n = 1.0 - conj2
    d2n = 1.0 - dis2
    x3 = jnp.concatenate([conj2, dis2, c2n, d2n], axis=1)  # (TB, 4*N2)
    x3c = 1.0 - x3
    sc3 = jnp.sum(jnp.log(1.0 - x3c[:, None, :] * wc3_ref[...][None, :, :]),
                  axis=-1)                                 # (TB, N3)
    sd3 = jnp.sum(jnp.log(1.0 - x3[:, None, :] * wd3_ref[...][None, :, :]),
                  axis=-1)                                 # (TB, N3)
    conj3 = pl.reciprocal(1.0 - sc3, approx=True)
    dis3 = 1.0 - pl.reciprocal(1.0 - sd3, approx=True)

    # ---- LRLayer on [conj3 | dis3 | conj2 | dis2 (skip)] : one matmul --------
    xlr = jnp.concatenate([conj3, dis3, conj2, dis2], axis=1)   # (TB, 2*N3+2*N2)
    out = jnp.dot(xlr, wlrt_ref[...], preferred_element_type=jnp.float32) \
          + blr_ref[...]
    out_ref[...] = out.astype(out_ref.dtype)


# ----------------------------------------------------------------------------
# Host-side, one-time parameter re-layout (constant-folded under jit):
#   * clip weights to [0, 1] (cheap insurance against optimizer drift),
#   * precompute clamped log(1 - W) for union-2 (binary-input matmul form),
#   * permute the pos/neg weight columns to k-major so the continuous repeat
#     can be a cheap in-kernel lane tile instead of a host-side jnp.repeat.
# ----------------------------------------------------------------------------
def prepare_kernel_params(params, disc_num, n_bin):
    cl = params["cl"]                        # (K, CONT)
    k, cont = cl.shape
    assert k == n_bin
    ck = cont * k
    d = disc_num
    # perm[k*C + c] = c*K + k  (original binarize column order -> k-major)
    perm = np.arange(ck).reshape(cont, k).T.reshape(-1)

    def reorder(w):
        w = jnp.clip(w, 0.0, 1.0)
        return jnp.concatenate(
            [w[:, :d], w[:, d:d + ck][:, perm], w[:, d + ck:][:, perm]], axis=1)

    def safelog1m(w):                        # clamped log(1 - W), no -inf
        return jnp.maximum(jnp.log1p(-w), _LOG_FLOOR)

    wc2 = reorder(params["wc2"])
    wd2 = reorder(params["wd2"])
    return {
        # binarize thresholds, k-major: col k*C + c == cl[k, c]
        "cl_flat": cl.reshape(1, ck),
        # union2: clamped log(1-W), transposed for a @ L^T matmuls
        "lc2t": safelog1m(wc2).T,            # (D_bin, N2)
        "ld2t": safelog1m(wd2).T,            # (D_bin, N2)
        # union3: full (N3, 4*N2) matrices (log path must stay)
        "wc3": jnp.clip(params["wc3"], 0.0, 1.0),
        "wd3": jnp.clip(params["wd3"], 0.0, 1.0),
        # LR: single stacked weight, rows ordered [conj3 | dis3 | conj2 | dis2]
        "wlrt": params["w_lr"].T,            # (2*N3 + 2*N2, N_OUT)
        "blr": params["b_lr"].reshape(1, -1),
    }


def net_forward(x, kp, disc_num, n_bin, *, tb=None):
    b = x.shape[0]
    x_disc = x[:, :disc_num]
    x_cont = x[:, disc_num:]
    n_out = kp["blr"].shape[1]

    # Batch tile: big enough to hide the per-step overhead, small enough that
    # the two live (TB, N3, 4*N2) f32 log temporaries + double-buffered input
    # tiles stay far below v7x's 64 MiB physical VMEM (and v5e's scoped limit).
    if tb is None:
        tb = b if b <= 512 else 512
    grid = (pl.cdiv(b, tb),)

    def batch_spec(f):
        return pl.BlockSpec((tb, f), lambda i: (i, 0))

    def const_spec(arr):
        return pl.BlockSpec(arr.shape, lambda i: (0, 0))   # resident weights

    in_specs = [
        batch_spec(x_disc.shape[1]),
        batch_spec(x_cont.shape[1]),
        const_spec(kp["cl_flat"]),
        const_spec(kp["lc2t"]),
        const_spec(kp["ld2t"]),
        const_spec(kp["wc3"]),
        const_spec(kp["wd3"]),
        const_spec(kp["wlrt"]),
        const_spec(kp["blr"]),
    ]
    out_specs = pl.BlockSpec((tb, n_out), lambda i: (i, 0))

    kernel = functools.partial(_net_fused_kernel, n_bin=n_bin)
    return pl.pallas_call(
        kernel,
        grid=grid,
        in_specs=in_specs,
        out_specs=out_specs,
        out_shape=jax.ShapeDtypeStruct((b, n_out), jnp.float32),
        compiler_params=pltpu.CompilerParams(
            dimension_semantics=("parallel",),       # megacore / 2 TCs on v7x
            vmem_limit_bytes=32 * 1024 * 1024,       # above v5e's 16 MiB default
        ),
    )(x_disc, x_cont, kp["cl_flat"], kp["lc2t"], kp["ld2t"],
      kp["wc3"], kp["wd3"], kp["wlrt"], kp["blr"])


# ----------------------------------------------------------------------------
# Pure-JAX reference (original math, exact division) for a sanity check.
# ----------------------------------------------------------------------------
def net_forward_ref(x, params, disc_num):
    def binarize_ref(x):
        x_disc, xc = x[:, :disc_num], x[:, disc_num:]
        diff = xc[:, :, None] - params["cl"].T[None, :, :]
        pos = (diff > 0.0).astype(jnp.float32).reshape(x.shape[0], -1)
        return jnp.concatenate([x_disc, pos, 1.0 - pos], axis=1)

    def union_ref(x, wc, wd, use_not):
        if use_not:
            x = jnp.concatenate([x, 1.0 - x], axis=1)
        sc = jnp.sum(jnp.log(1.0 - (1.0 - x)[:, None, :] * wc[None, :, :]), -1)
        conj = -1.0 / (-1.0 + sc)
        sd = jnp.sum(jnp.log(1.0 - x[:, None, :] * wd[None, :, :]), -1)
        dis = 1.0 - (-1.0 / (-1.0 + sd))
        return jnp.concatenate([conj, dis], axis=1)

    x = binarize_ref(x)
    x = union_ref(x, params["wc2"], params["wd2"], False)
    x_res = x
    x = union_ref(x, params["wc3"], params["wd3"], True)
    x = jnp.concatenate([x, x_res], axis=1)
    return (jnp.einsum("bd,od->bo", x, params["w_lr"],
                       precision=jax.lax.Precision.HIGHEST)
            + params["b_lr"][None, :])


if __name__ == "__main__":
    # dim_list = [(4, 4), 4, 8, 8, 3], use_skip=True, regression=False
    DISC, CONT = 4, 4
    N_BIN = 4                       # thresholds per continuous feature
    N2, N3, N_OUT = 8, 8, 3
    B = 8

    bin_out_dim = DISC + 2 * CONT * N_BIN        # 36
    u2_out = 2 * N2                              # 16
    u3_in = 2 * u2_out                           # 32 (use_not doubles)
    lr_in = 2 * N3 + u2_out                      # 32 (skip concat)

    key = jax.random.PRNGKey(0)
    ks = jax.random.split(key, 9)
    INIT_RANGE = 0.5
    params = {
        "cl": jax.random.normal(ks[0], (N_BIN, CONT), jnp.float32),
        "wc2": INIT_RANGE * jax.random.uniform(ks[1], (N2, bin_out_dim), jnp.float32),
        "wd2": INIT_RANGE * jax.random.uniform(ks[2], (N2, bin_out_dim), jnp.float32),
        "wc3": INIT_RANGE * jax.random.uniform(ks[3], (N3, u3_in), jnp.float32),
        "wd3": INIT_RANGE * jax.random.uniform(ks[4], (N3, u3_in), jnp.float32),
        "w_lr": (jax.random.uniform(ks[5], (N_OUT, lr_in), jnp.float32) - 0.5)
                / np.sqrt(lr_in),
        "b_lr": (jax.random.uniform(ks[6], (N_OUT,), jnp.float32) - 0.5)
                / np.sqrt(lr_in),
    }
    # TODO(synk): self.t (temperature) is a Net parameter but unused in forward().

    x_disc = jax.random.bernoulli(ks[7], 0.5, (B, DISC)).astype(jnp.float32)
    x_cont = jax.random.normal(ks[8], (B, CONT), jnp.float32)
    x = jnp.concatenate([x_disc, x_cont], axis=1)   # (B, 8)

    kparams = prepare_kernel_params(params, DISC, N_BIN)
    fwd = jax.jit(lambda xx: net_forward(xx, kparams, DISC, N_BIN))
    out = fwd(x)
    jax.block_until_ready(out)

    ref = net_forward_ref(x, params, DISC)
    # Tolerance absorbs pl.reciprocal(approx=True) and MXU f32 rounding; real
    # semantic bugs show up at O(1e-1), so this still checks correctness.
    np.testing.assert_allclose(np.asarray(out), np.asarray(ref),
                               rtol=5e-3, atol=5e-3)
    assert out.shape == (B, N_OUT)
    print("KERNEL_OK")
</pallas_src>

<mosaic_0001>
module attributes {stable_mosaic.version = 11 : i64} {
  func.func @_net_fused_kernel(%arg0: i32, %arg1: memref<8x4xf32, #tpu.memory_space<vmem>>, %arg2: memref<8x4xf32, #tpu.memory_space<vmem>>, %arg3: memref<1x16xf32, #tpu.memory_space<vmem>>, %arg4: memref<36x8xf32, #tpu.memory_space<vmem>>, %arg5: memref<36x8xf32, #tpu.memory_space<vmem>>, %arg6: memref<8x32xf32, #tpu.memory_space<vmem>>, %arg7: memref<8x32xf32, #tpu.memory_space<vmem>>, %arg8: memref<32x3xf32, #tpu.memory_space<vmem>>, %arg9: memref<1x3xf32, #tpu.memory_space<vmem>>, %arg10: memref<8x3xf32, #tpu.memory_space<vmem>>) attributes {dimension_semantics = [#tpu.dimension_semantics<parallel>], iteration_bounds = array<i64: 1>, scalar_prefetch = 0 : i64, scratch_operands = 0 : i64, tpu.core_type = #tpu.core_type<tc>, window_params = [{transform_indices = @transform_0, window_bounds = array<i64: 8, 4>}, {transform_indices = @transform_1, window_bounds = array<i64: 8, 4>}, {pipeline_mode = #tpu.pipeline_mode<synchronous>, transform_indices = @transform_2, window_bounds = array<i64: 1, 16>}, {pipeline_mode = #tpu.pipeline_mode<synchronous>, transform_indices = @transform_3, window_bounds = array<i64: 36, 8>}, {pipeline_mode = #tpu.pipeline_mode<synchronous>, transform_indices = @transform_4, window_bounds = array<i64: 36, 8>}, {pipeline_mode = #tpu.pipeline_mode<synchronous>, transform_indices = @transform_5, window_bounds = array<i64: 8, 32>}, {pipeline_mode = #tpu.pipeline_mode<synchronous>, transform_indices = @transform_6, window_bounds = array<i64: 8, 32>}, {pipeline_mode = #tpu.pipeline_mode<synchronous>, transform_indices = @transform_7, window_bounds = array<i64: 32, 3>}, {pipeline_mode = #tpu.pipeline_mode<synchronous>, transform_indices = @transform_8, window_bounds = array<i64: 1, 3>}, {transform_indices = @transform_9, window_bounds = array<i64: 8, 3>}]} {
    %c0 = arith.constant 0 : index
    %c0_0 = arith.constant 0 : index
    %0 = vector.load %arg1[%c0, %c0_0] : memref<8x4xf32, #tpu.memory_space<vmem>>, vector<8x4xf32>
    %c0_1 = arith.constant 0 : index
    %c0_2 = arith.constant 0 : index
    %1 = vector.load %arg2[%c0_1, %c0_2] : memref<8x4xf32, #tpu.memory_space<vmem>>, vector<8x4xf32>
    %2 = tpu.concatenate %1, %1, %1, %1 in 1 : vector<8x4xf32>, vector<8x4xf32>, vector<8x4xf32>, vector<8x4xf32> -> vector<8x16xf32>
    %c0_3 = arith.constant 0 : index
    %c0_4 = arith.constant 0 : index
    %3 = vector.load %arg3[%c0_3, %c0_4] : memref<1x16xf32, #tpu.memory_space<vmem>>, vector<1x16xf32>
    %4 = vector.broadcast %3 : vector<1x16xf32> to vector<8x16xf32>
    %5 = arith.cmpf ogt, %2, %4 : vector<8x16xf32>
    %cst = arith.constant 1.000000e+00 : f32
    %cst_5 = arith.constant 0.000000e+00 : f32
    %6 = vector.broadcast %cst : f32 to vector<8x16xf32>
    %7 = vector.broadcast %cst_5 : f32 to vector<8x16xf32>
    %8 = arith.select %5, %6, %7 : vector<8x16xi1>, vector<8x16xf32>
    %cst_6 = arith.constant 1.000000e+00 : f32
    %9 = vector.broadcast %cst_6 : f32 to vector<8x16xf32>
    %10 = arith.subf %9, %8 : vector<8x16xf32>
    %11 = tpu.concatenate %0, %8, %10 in 1 : vector<8x4xf32>, vector<8x16xf32>, vector<8x16xf32> -> vector<8x36xf32>
    %cst_7 = arith.constant 1.000000e+00 : f32
    %12 = vector.broadcast %cst_7 : f32 to vector<8x36xf32>
    %13 = arith.subf %12, %11 : vector<8x36xf32>
    %c0_8 = arith.constant 0 : index
    %c0_9 = arith.constant 0 : index
    %14 = vector.load %arg4[%c0_8, %c0_9] : memref<36x8xf32, #tpu.memory_space<vmem>>, vector<36x8xf32>
    %cst_10 = arith.constant dense<0.000000e+00> : vector<8x8xf32>
    %15 = tpu.matmul %13, %14, %cst_10 {dimension_numbers = #tpu.dot_dimension_numbers<[1], [0], [0], [1], [0, 0, 1, 1], [], []>} : vector<8x36xf32>, vector<36x8xf32>, vector<8x8xf32> -> vector<8x8xf32>
    %c0_11 = arith.constant 0 : index
    %c0_12 = arith.constant 0 : index
    %16 = vector.load %arg5[%c0_11, %c0_12] : memref<36x8xf32, #tpu.memory_space<vmem>>, vector<36x8xf32>
    %cst_13 = arith.constant dense<0.000000e+00> : vector<8x8xf32>
    %17 = tpu.matmul %11, %16, %cst_13 {dimension_numbers = #tpu.dot_dimension_numbers<[1], [0], [0], [1], [0, 0, 1, 1], [], []>} : vector<8x36xf32>, vector<36x8xf32>, vector<8x8xf32> -> vector<8x8xf32>
    %cst_14 = arith.constant 1.000000e+00 : f32
    %18 = vector.broadcast %cst_14 : f32 to vector<8x8xf32>
    %19 = arith.subf %18, %15 : vector<8x8xf32>
    %20 = tpu.reciprocal %19 {approx = true} : vector<8x8xf32> -> vector<8x8xf32>
    %cst_15 = arith.constant 0.000000e+00 : f32
    %cst_16 = arith.constant 1.000000e+00 : f32
    %21 = vector.broadcast %cst_15 : f32 to vector<8x8xf32>
    %22 = arith.maximumf %21, %20 : vector<8x8xf32>
    %23 = vector.broadcast %cst_16 : f32 to vector<8x8xf32>
    %24 = arith.minimumf %23, %22 : vector<8x8xf32>
    %cst_17 = arith.constant 1.000000e+00 : f32
    %25 = vector.broadcast %cst_17 : f32 to vector<8x8xf32>
    %26 = arith.subf %25, %17 : vector<8x8xf32>
    %27 = tpu.reciprocal %26 {approx = true} : vector<8x8xf32> -> vector<8x8xf32>
    %cst_18 = arith.constant 1.000000e+00 : f32
    %28 = vector.broadcast %cst_18 : f32 to vector<8x8xf32>
    %29 = arith.subf %28, %27 : vector<8x8xf32>
    %cst_19 = arith.constant 0.000000e+00 : f32
    %cst_20 = arith.constant 1.000000e+00 : f32
    %30 = vector.broadcast %cst_19 : f32 to vector<8x8xf32>
    %31 = arith.maximumf %30, %29 : vector<8x8xf32>
    %32 = vector.broadcast %cst_20 : f32 to vector<8x8xf32>
    %33 = arith.minimumf %32, %31 : vector<8x8xf32>
    %cst_21 = arith.constant 1.000000e+00 : f32
    %34 = vector.broadcast %cst_21 : f32 to vector<8x8xf32>
    %35 = arith.subf %34, %24 : vector<8x8xf32>
    %cst_22 = arith.constant 1.000000e+00 : f32
    %36 = vector.broadcast %cst_22 : f32 to vector<8x8xf32>
    %37 = arith.subf %36, %33 : vector<8x8xf32>
    %38 = tpu.concatenate %24, %33, %35, %37 in 1 : vector<8x8xf32>, vector<8x8xf32>, vector<8x8xf32>, vector<8x8xf32> -> vector<8x32xf32>
    %cst_23 = arith.constant 1.000000e+00 : f32
    %39 = vector.broadcast %cst_23 : f32 to vector<8x32xf32>
    %40 = arith.subf %39, %38 : vector<8x32xf32>
    %41 = vector.shape_cast %40 : vector<8x32xf32> to vector<8x1x32xf32>
    %c0_24 = arith.constant 0 : index
    %c0_25 = arith.constant 0 : index
    %42 = vector.load %arg6[%c0_24, %c0_25] : memref<8x32xf32, #tpu.memory_space<vmem>>, vector<8x32xf32>
    %43 = vector.shape_cast %42 : vector<8x32xf32> to vector<1x8x32xf32>
    %44 = vector.broadcast %41 : vector<8x1x32xf32> to vector<8x8x32xf32>
    %45 = vector.broadcast %43 : vector<1x8x32xf32> to vector<8x8x32xf32>
    %46 = arith.mulf %44, %45 : vector<8x8x32xf32>
    %cst_26 = arith.constant 1.000000e+00 : f32
    %47 = vector.broadcast %cst_26 : f32 to vector<8x8x32xf32>
    %48 = arith.subf %47, %46 : vector<8x8x32xf32>
    %49 = math.log %48 : vector<8x8x32xf32>
    %cst_27 = arith.constant dense<0.000000e+00> : vector<8x8xf32>
    %50 = vector.multi_reduction <add>, %49, %cst_27 [2] : vector<8x8x32xf32> to vector<8x8xf32>
    %51 = vector.shape_cast %38 : vector<8x32xf32> to vector<8x1x32xf32>
    %c0_28 = arith.constant 0 : index
    %c0_29 = arith.constant 0 : index
    %52 = vector.load %arg7[%c0_28, %c0_29] : memref<8x32xf32, #tpu.memory_space<vmem>>, vector<8x32xf32>
    %53 = vector.shape_cast %52 : vector<8x32xf32> to vector<1x8x32xf32>
    %54 = vector.broadcast %51 : vector<8x1x32xf32> to vector<8x8x32xf32>
    %55 = vector.broadcast %53 : vector<1x8x32xf32> to vector<8x8x32xf32>
    %56 = arith.mulf %54, %55 : vector<8x8x32xf32>
    %cst_30 = arith.constant 1.000000e+00 : f32
    %57 = vector.broadcast %cst_30 : f32 to vector<8x8x32xf32>
    %58 = arith.subf %57, %56 : vector<8x8x32xf32>
    %59 = math.log %58 : vector<8x8x32xf32>
    %cst_31 = arith.constant dense<0.000000e+00> : vector<8x8xf32>
    %60 = vector.multi_reduction <add>, %59, %cst_31 [2] : vector<8x8x32xf32> to vector<8x8xf32>
    %cst_32 = arith.constant 1.000000e+00 : f32
    %61 = vector.broadcast %cst_32 : f32 to vector<8x8xf32>
    %62 = arith.subf %61, %50 : vector<8x8xf32>
    %63 = tpu.reciprocal %62 {approx = true} : vector<8x8xf32> -> vector<8x8xf32>
    %cst_33 = arith.constant 1.000000e+00 : f32
    %64 = vector.broadcast %cst_33 : f32 to vector<8x8xf32>
    %65 = arith.subf %64, %60 : vector<8x8xf32>
    %66 = tpu.reciprocal %65 {approx = true} : vector<8x8xf32> -> vector<8x8xf32>
    %cst_34 = arith.constant 1.000000e+00 : f32
    %67 = vector.broadcast %cst_34 : f32 to vector<8x8xf32>
    %68 = arith.subf %67, %66 : vector<8x8xf32>
    %69 = tpu.concatenate %63, %68, %24, %33 in 1 : vector<8x8xf32>, vector<8x8xf32>, vector<8x8xf32>, vector<8x8xf32> -> vector<8x32xf32>
    %c0_35 = arith.constant 0 : index
    %c0_36 = arith.constant 0 : index
    %70 = vector.load %arg8[%c0_35, %c0_36] : memref<32x3xf32, #tpu.memory_space<vmem>>, vector<32x3xf32>
    %cst_37 = arith.constant dense<0.000000e+00> : vector<8x3xf32>
    %71 = tpu.matmul %69, %70, %cst_37 {dimension_numbers = #tpu.dot_dimension_numbers<[1], [0], [0], [1], [0, 0, 1, 1], [], []>} : vector<8x32xf32>, vector<32x3xf32>, vector<8x3xf32> -> vector<8x3xf32>
    %c0_38 = arith.constant 0 : index
    %c0_39 = arith.constant 0 : index
    %72 = vector.load %arg9[%c0_38, %c0_39] : memref<1x3xf32, #tpu.memory_space<vmem>>, vector<1x3xf32>
    %73 = vector.broadcast %72 : vector<1x3xf32> to vector<8x3xf32>
    %74 = arith.addf %71, %73 : vector<8x3xf32>
    %c0_40 = arith.constant 0 : index
    %c0_41 = arith.constant 0 : index
    %75 = vector.load %arg10[%c0_40, %c0_41] : memref<8x3xf32, #tpu.memory_space<vmem>>, vector<8x3xf32>
    tpu.vector_store %arg10[%c0_40, %c0_41], %74 {strides = array<i32>} : memref<8x3xf32, #tpu.memory_space<vmem>>, vector<8x3xf32>,
    return
  }
  func.func @transform_0(%arg0: i32) -> (i32, i32) {
    %c0_i32 = arith.constant 0 : i32
    %c0_i32_0 = arith.constant 0 : i32
    return %arg0, %c0_i32 : i32, i32
  }
  func.func @transform_1(%arg0: i32) -> (i32, i32) {
    %c0_i32 = arith.constant 0 : i32
    %c0_i32_0 = arith.constant 0 : i32
    return %arg0, %c0_i32 : i32, i32
  }
  func.func @transform_2(%arg0: i32) -> (i32, i32) {
    %c0_i32 = arith.constant 0 : i32
    %c0_i32_0 = arith.constant 0 : i32
    %c0_i32_1 = arith.constant 0 : i32
    return %c0_i32, %c0_i32_0 : i32, i32
  }
  func.func @transform_3(%arg0: i32) -> (i32, i32) {
    %c0_i32 = arith.constant 0 : i32
    %c0_i32_0 = arith.constant 0 : i32
    %c0_i32_1 = arith.constant 0 : i32
    return %c0_i32, %c0_i32_0 : i32, i32
  }
  func.func @transform_4(%arg0: i32) -> (i32, i32) {
    %c0_i32 = arith.constant 0 : i32
    %c0_i32_0 = arith.constant 0 : i32
    %c0_i32_1 = arith.constant 0 : i32
    return %c0_i32, %c0_i32_0 : i32, i32
  }
  func.func @transform_5(%arg0: i32) -> (i32, i32) {
    %c0_i32 = arith.constant 0 : i32
    %c0_i32_0 = arith.constant 0 : i32
    %c0_i32_1 = arith.constant 0 : i32
    return %c0_i32, %c0_i32_0 : i32, i32
  }
  func.func @transform_6(%arg0: i32) -> (i32, i32) {
    %c0_i32 = arith.constant 0 : i32
    %c0_i32_0 = arith.constant 0 : i32
    %c0_i32_1 = arith.constant 0 : i32
    return %c0_i32, %c0_i32_0 : i32, i32
  }
  func.func @transform_7(%arg0: i32) -> (i32, i32) {
    %c0_i32 = arith.constant 0 : i32
    %c0_i32_0 = arith.constant 0 : i32
    %c0_i32_1 = arith.constant 0 : i32
    return %c0_i32, %c0_i32_0 : i32, i32
  }
  func.func @transform_8(%arg0: i32) -> (i32, i32) {
    %c0_i32 = arith.constant 0 : i32
    %c0_i32_0 = arith.constant 0 : i32
    %c0_i32_1 = arith.constant 0 : i32
    return %c0_i32, %c0_i32_0 : i32, i32
  }
  func.func @transform_9(%arg0: i32) -> (i32, i32) {
    %c0_i32 = arith.constant 0 : i32
    %c0_i32_0 = arith.constant 0 : i32
    return %arg0, %c0_i32 : i32, i32
  }
}

</mosaic_0001>

<bundles_post_ra>
// kernel: _lambda_.1
= control target key start
LH: loop header
LB: loop body
LE: loop exit
PB: predicated region body
PF: predicated region fallthrough
CT: control target
= control target key end

     0   :  { %14 = vsyncpa [#allocation3], 0  ;;  %s1349_s0 = inlined_call_operand.vmem [shape: f32[8,4], index: 0, kind: input, shape index: {}]   ;;  %s1350_s1 = inlined_call_operand.vmem [shape: f32[8,4], index: 1, kind: input, shape index: {}]   ;;  %s1351_s2 = inlined_call_operand.hbm [shape: f32[1,16], index: 2, kind: input, shape index: {}]   ;;  %s1352_s3 = inlined_call_operand.hbm [shape: f32[36,8], index: 3, kind: input, shape index: {}]   ;;  %s1353_s4 = inlined_call_operand.vmem [shape: f32[36,8], index: 4, kind: input, shape index: {}]   ;;  %s1354_s5 = inlined_call_operand.hbm [shape: f32[8,32], index: 5, kind: input, shape index: {}]   ;;  %s1355_s6 = inlined_call_operand.hbm [shape: f32[8,32], index: 6, kind: input, shape index: {}]   ;;  %s1356_s7 = inlined_call_operand.hbm [shape: f32[32,3], index: 7, kind: input, shape index: {}]   ;;  %s1357_s8 = inlined_call_operand.vmem [shape: f32[1,3], index: 8, kind: input, shape index: {}]   ;;  %s1358_s9 = inlined_call_operand.vmem [shape: f32[8,3], index: 9, kind: output, shape index: {}]  }
   0x1   :  { %15 = vsyncpa [#allocation5], 0 }
   0x2   :  { %16 = vsyncpa [#allocation8], 0  ;;  %s1121_s30 = smov [#allocation4]  }
   0x3   :  { %s36_s10 = sshll.u32 %s1121_s30, 4  ;;  %s37_s10 = int_to_ptr.vmem [resolvable:$true] %s36_s10 }
   0x4   :  { %s1023_s11 = scalar_lea.vmem %s37_s10, 640  ;;  %p1028_p1 = scmp.lt.s32.totalorder %s37_s10, %s37_s10 }
   0x5   :  { %p1024_p0 = scmp.ne.s32.totalorder %s37_s10, %s1023_s11  ;;  %p1029_p2 = scmp.lt.s32.totalorder %s1023_s11, %s1023_s11 }
   0x7   :  { %p1030_p3 = por %p1029_p2, %p1028_p1 }
   0x9   :  { %p1031_p4 = pnand %p1030_p3, %p1024_p0 }
   0xb   :  { %1034 = shalt.err (!%p1031_p4)
}
   0xc   :  { %s1122_s12 = smov 128   ;;  %s1123_s13 = smov 8  }
   0xd   :  { %42 = dma.hbm_to_vmem [thread:$0]  %s1352_s3, 640, %s37_s10, [#allocation5], %s1122_s12, %s1122_s12, %s1123_s13  }
   0xe   :  { %s1124_s16 = smov [#allocation7]   ;;  %s1125_s18 = smov [#allocation2]  }
   0xf   :  { %s61_s17 = sshll.u32 %s1124_s16, 4  ;;  %s27_s19 = sshll.u32 %s1125_s18, 4  ;;  %s62_s17 = int_to_ptr.vmem [resolvable:$true] %s61_s17  ;;  %s28_s19 = int_to_ptr.vmem [resolvable:$true] %s27_s19 }
  0x10   :  { %s1043_s20 = scalar_lea.vmem %s62_s17, 128  ;;  %p1048_p6 = scmp.lt.s32.totalorder %s62_s17, %s62_s17 }
  0x11   :  { %p1044_p5 = scmp.ne.s32.totalorder %s62_s17, %s1043_s20  ;;  %p1049_p7 = scmp.lt.s32.totalorder %s1043_s20, %s1043_s20 }
  0x13   :  { %p1050_p8 = por %p1049_p7, %p1048_p6 }
  0x15   :  { %p1051_p9 = pnand %p1050_p8, %p1044_p5 }
  0x17   :  { %1054 = shalt.err (!%p1051_p9)
}
  0x18   :  { %64 = dma.hbm_to_vmem [thread:$0]  %s1355_s6, 128, %s62_s17, [#allocation8]  }
  0x19   :  { %s1063_s23 = scalar_lea.vmem %s28_s19, 16  ;;  %s1067_s3 = scalar_lea.vmem %s28_s19, 32 }
  0x1a   :  { %p1064_p10 = scmp.ne.s32.totalorder %s28_s19, %s1063_s23  ;;  %p1068_p11 = scmp.lt.s32.totalorder %s28_s19, %s28_s19 }
  0x1b   :  { %p1069_p12 = scmp.lt.s32.totalorder %s1067_s3, %s1063_s23 }
  0x1d   :  { %p1070_p13 = por %p1069_p12, %p1068_p11 }
  0x1f   :  { %p1071_p0 = pnand %p1070_p13, %p1064_p10 }
  0x21   :  { %1074 = shalt.err (!%p1071_p0)
}
  0x22   :  { %30 = dma.hbm_to_vmem [thread:$0]  %s1351_s2, 16, %s28_s19, [#allocation3]  }
  0x23   :  { %s1126_s26 = smov [#allocation6]   ;;  %s1127_s28 = smov [#allocation9]  }
  0x24   :  { %s51_s27 = sshll.u32 %s1126_s26, 4  ;;  %s70_s29 = sshll.u32 %s1127_s28, 4  ;;  %s52_s27 = int_to_ptr.vmem [resolvable:$true] %s51_s27  ;;  %s71_s29 = int_to_ptr.vmem [resolvable:$true] %s70_s29 }
  0x25   :  { %s1083_s30 = scalar_lea.vmem %s52_s27, 128  ;;  %p1088_p2 = scmp.lt.s32.totalorder %s52_s27, %s52_s27 }
  0x26   :  { %p1084_p1 = scmp.ne.s32.totalorder %s52_s27, %s1083_s30  ;;  %p1089_p3 = scmp.lt.s32.totalorder %s1083_s30, %s1083_s30 }
  0x28   :  { %p1090_p4 = por %p1089_p3, %p1088_p2 }
  0x2a   :  { %p1091_p5 = pnand %p1090_p4, %p1084_p1 }
  0x2c   :  { %1094 = shalt.err (!%p1091_p5)
}
  0x2d   :  { %54 = dma.hbm_to_vmem [thread:$0]  %s1354_s5, 128, %s52_s27, [#allocation5]  }
  0x2e   :  { %s1103_s11 = scalar_lea.vmem %s71_s29, 512  ;;  %p1108_p7 = scmp.lt.s32.totalorder %s71_s29, %s71_s29 }
  0x2f   :  { %p1104_p6 = scmp.ne.s32.totalorder %s71_s29, %s1103_s11  ;;  %p1109_p8 = scmp.lt.s32.totalorder %s1103_s11, %s1103_s11 }
  0x31   :  { %p1110_p9 = por %p1109_p8, %p1108_p7 }
  0x33   :  { %p1111_p10 = pnand %p1110_p9, %p1104_p6 }
  0x35   :  { %1114 = shalt.err (!%p1111_p10)
}
  0x36   :  { %76 = dma.hbm_to_vmem [thread:$0]  %s1356_s7, 512, %s71_s29, [#allocation8], %s1122_s12, %s1122_s12, %s1123_s13  }
  0x37   :  { %1115 = dma.done.wait [#allocation3], 16  }
  0x38   :  { %1116 = vsyncadd [#allocation3], 4294967280 }
  0x39   :  { %1117 = dma.done.wait [#allocation5], 768  }
  0x3a   :  { %1118 = vsyncadd [#allocation5], 4294966528 }
  0x3b   :  { %1119 = dma.done.wait [#allocation8], 640  }
  0x3c   :  { %1120 = vsyncadd [#allocation8], 4294966656  ;;  %v1128_v0 = vmov 0.0   ;;  %vm143_vm0 = vcmask 1043456   ;;  %v95_v1 = vld [vmem:[%s1350_s1] sm:$0xff]  ;;  %s1129_s7 = smov 4   ;;  %v332_v44 = vlaneseq }
  0x3d   :  { %908 = vmatprep.subr.mxu1 %v1128_v0  ;;  %895 = vmatprep.subr.mxu0 %v1128_v0  ;;  %v221_v2 = vld [vmem:[%s1353_s4 + $0x20] sm:$0xf]  ;;  %s1130_s12 = smov 12   ;;  %v220_v4 = vld [vmem:[%s1353_s4 + $0x18] sm:$0xff]  ;;  %v219_v6 = vld [vmem:[%s1353_s4 + $0x10] sm:$0xff]  ;;  %vm1131_vm1 = vmmov 0  }
  0x3e   :  { %97 = vrot.lane.b32.xlu0 %v95_v1, %s1129_s7  ;;  %103 = vrot.lane.b32.xlu1 %v95_v1, %s1130_s12  ;;  %v138_v3 = vld [vmem:[#allocation4 + $0x20] sm:$0xf]  ;;  %v137_v5 = vld [vmem:[#allocation4 + $0x18] sm:$0xff]  ;;  %v136_v7 = vld [vmem:[#allocation4 + $0x10] sm:$0xff]  ;;  %vm106_vm2 = vcmask 31744   ;;  %vm108_vm3 = vcmask 64512  }
  0x3f   :  { %909 = vmatpush3.msk.msra.mxu1 %vm143_vm0, %v221_v2  ;;  %896 = vmatpush3.msk.msra.mxu0 %vm143_vm0, %v138_v3  ;;  %v218_v8 = vld [vmem:[%s1353_s4 + $0x8] sm:$0xff]  ;;  %v217_v10 = vld [vmem:[%s1353_s4] sm:$0xff]  ;;  %vm110_vm4 = vcmask 97280   ;;  %s1132_s4 = smov 20   ;;  %vm131_vm6 = vcmask 162816   ;;  %vm139_vm7 = vcmask 293888  }
  0x40   :  { %910 = vmatprep.subr.mxu1 %v1128_v0  ;;  %897 = vmatprep.subr.mxu0 %v1128_v0  ;;  %v135_v9 = vld [vmem:[#allocation4 + $0x8] sm:$0xff]  ;;  %v134_v11 = vld [vmem:[#allocation4] sm:$0xff]  ;;  %v871_v16 = vld [vmem:[#allocation2] ss:$0 sm:$0xff]  ;;  %s1134_s26 = smov 24   ;;  %v1263_v46 = vshrl.u32 %v332_v44, 7 }
  0x41   :  { %911 = vmatpush3.msra.mxu1 %v220_v4  ;;  %898 = vmatpush3.msra.mxu0 %v137_v5  ;;  %v94_v21 = vld [vmem:[%s1349_s0] sm:$0xff]  ;;  %s1133_s0 = smov 16   ;;  %v1135_v42 = vmov 1966171168   ;;  %vm322_vm8 = vcmask 130048   ;;  %vm324_vm9 = vcmask 195584  }
  0x42   :  { %100 = vrot.lane.b32.xlu0 %v95_v1, %s1123_s13  ;;  %912 = vmatprep.subr.mxu1 %v1128_v0  ;;  %v330_v43 = vunpack.c.l.s4 %v1135_v42  ;;  %v1271_v57 = vsub.s32 0, %v1263_v46  ;;  %v1273_v3 = vld [vmem:[#allocation7] sm:$0xff]  ;;  %vm450_vm10 = vcmask 261120   ;;  %vm704_vm11 = vcmask 1041409  }
  0x43   :  { %913 = vmatpush3.msra.mxu1 %v219_v6  ;;  %899 = vmatprep.subr.mxu0 %v1128_v0  ;;  %vm706_vm12 = vcmask 1042434   ;;  %vm708_vm13 = vcmask 1043459   ;;  %vm710_vm14 = vcmask 1044484   ;;  %vm712_vm15 = vcmask 1045509  }
  0x44   :  { %914 = vmatprep.subr.mxu1 %v1128_v0  ;;  %900 = vmatpush3.msra.mxu0 %v136_v7  ;;  %v331_v45 = vunpack.c.0.s8 %v330_v43  ;;  %vm714_vm0 = vcmask 1046534  }
  0x45   :  { %915 = vmatpush3.msra.mxu1 %v218_v8  ;;  %901 = vmatprep.subr.mxu0 %v1128_v0 }
  0x46   :  { %916 = vmatprep.subr.mxu1 %v1128_v0  ;;  %902 = vmatpush3.msra.mxu0 %v135_v9  ;;  %v334_v50 = vsub.s32 %v331_v45, %v1263_v46 }
  0x47   :  { %917 = vmatpush3.msra.mxu1 %v217_v10  ;;  %918 = vmatprep.mubr.msk.f32.mxu1 %vm1131_vm1, %v1128_v0 }
  0x48   :  { %903 = vmatprep.subr.mxu0 %v1128_v0  ;;  %905 = vmatprep.mubr.msk.f32.mxu0 %vm1131_vm1, %v1128_v0 }
  0x49   :  { %904 = vmatpush3.msra.mxu0 %v134_v11 }
  0x4a   :  { %921 = vmatprep.subr.mxu0 %v1128_v0 }
  0xb0   :  { %v98_v12 = vpop.permute.xlu0 %97  ;;  %v104_v13 = vpop.permute.xlu1 %103 }
  0xb1   :  { %v107_v14 = vsel %vm106_vm2, %v95_v1, %v98_v12 }
  0xb4   :  { %v101_v15 = vpop.permute.xlu0 %100 }
  0xb5   :  { %v109_v17 = vsel %vm108_vm3, %v107_v14, %v101_v15  ;;  %v1277_v15 = vld [vmem:[#allocation6] sm:$0xff] }
  0xb6   :  { %v111_v18 = vsel %vm110_vm4, %v109_v17, %v104_v13 }
  0xb7   :  { %vm119_vm5 = vcmp.gt.f32.partialorder %v111_v18, %v871_v16 }
  0xb8   :  { %v120_v19 = vsel %vm119_vm5, 1.0, %v1128_v0 }
  0xb9   :  { %123 = vrot.lane.b32.xlu1 %v120_v19, %s1129_s7  ;;  %v121_v20 = vsub.f32 1.0, %v120_v19 }
  0xbb   :  { %127 = vrot.lane.b32.xlu0 %v121_v20, %s1132_s4 }
 0x12b   :  { %v124_v22 = vpop.permute.xlu1 %123 }
 0x12c   :  { %v130_v23 = vsel %vm106_vm2, %v94_v21, %v124_v22  ;;  %vm862_vm2 = vcmask 23552  }
 0x12d   :  { %v128_v24 = vpop.permute.xlu0 %127 }
 0x12e   :  { %v132_v25 = vsel %vm131_vm6, %v130_v23, %v128_v24 }
 0x12f   :  { %v133_v26 = vsub.f32 1.0, %v132_v25  ;;  %919 = vmatmul.mubr.msk.f32.vlgmr.msra.gmra.mxu1 %vm139_vm7, %v132_v25 }
 0x131   :  { %906 = vmatmul.mubr.msk.f32.vlgmr.msra.gmra.mxu0 %vm139_vm7, %v133_v26 }
 0x132   :  { %929 = vmatprep.mubr.msk.f32.mxu0 %vm1131_vm1, %v1128_v0  ;;  %vm716_vm1 = vcmask 1047559  }
 0x1ef   :  { %v294_v27 = vpop.f32.mrf.mxu1 }
 0x1f0   :  { %v302_v28 = vsub.f32 1.0, %v294_v27 }
 0x1f1   :  { %v213_v29 = vpop.f32.mrf.mxu0  ;;  %v920_v30 = vpop.f32.mrf.mxu1 }
 0x1f2   :  { %947 = vrcp.f32 %v302_v28  ;;  %v298_v31 = vsub.f32 1.0, %v213_v29 }
 0x1f3   :  { %v907_v32 = vpop.f32.mrf.mxu0 }
 0x1f4   :  { %949 = vrcp.f32 %v298_v31 }
 0x1ff   :  { %v948_v33 = vpop.eup %947 }
 0x200   :  { %v304_v34 = vsub.f32 1.0, %v948_v33 }
 0x201   :  { %v950_v35 = vpop.eup %949 }
 0x202   :  { %v300_v36 = vmax.f32 %v950_v35, 0.0  ;;  %v305_v37 = vmax.f32 %v304_v34, 0.0 }
 0x204   :  { %v1252_v38 = vmin.f32 %v300_v36, 1.0  ;;  %v1254_v39 = vmin.f32 %v305_v37, 1.0 }
 0x206   :  { %310 = vrot.lane.b32.xlu1 %v1254_v39, %s1123_s13  ;;  %v307_v40 = vsub.f32 1.0, %v1252_v38  ;;  %v308_v41 = vsub.f32 1.0, %v1254_v39 }
 0x208   :  { %314 = vrot.lane.b32.xlu0 %v307_v40, %s1133_s0 }
 0x20a   :  { %318 = vrot.lane.b32.xlu1 %v308_v41, %s1134_s26 }
 0x278   :  { %v311_v47 = vpop.permute.xlu1 %310 }
 0x279   :  { %v321_v48 = vsel %vm108_vm3, %v1252_v38, %v311_v47 }
 0x27a   :  { %v315_v49 = vpop.permute.xlu0 %314 }
 0x27b   :  { %v323_v51 = vsel %vm322_vm8, %v321_v48, %v315_v49 }
 0x27c   :  { %v319_v52 = vpop.permute.xlu1 %318 }
 0x27d   :  { %v325_v53 = vsel %vm324_vm9, %v323_v51, %v319_v52 }
 0x27e   :  { %v326_v54 = vsub.f32 1.0, %v325_v53  ;;  %v476_v55 = vcombine.high %v325_v53, %v325_v53  ;;  %v483_v56 = vrot.slane %v325_v53, %v334_v50 }
 0x280   :  { %v328_v58 = vcombine.high %v326_v54, %v326_v54  ;;  %v335_v59 = vrot.slane %v326_v54, %v334_v50  ;;  %v490_v60 = vrot.slane %v476_v55, %v334_v50  ;;  %v491_v61 = vcombine.high %v483_v56, %v483_v56 }
 0x281   :  { %v499_v62 = vrot.slane %v483_v56, %v334_v50 }
 0x282   :  { %v342_v63 = vrot.slane %v328_v58, %v334_v50  ;;  %v343_v1 = vcombine.high %v335_v59, %v335_v59  ;;  %v351_v2 = vrot.slane %v335_v59, %v334_v50  ;;  %v506_v4 = vrot.slane %v490_v60, %v334_v50 }
 0x283   :  { %v513_v5 = vrot.slane %v491_v61, %v334_v50  ;;  %v521_v6 = vcombine.high %v499_v62, %v499_v62  ;;  %v529_v7 = vrot.slane %v499_v62, %v1271_v57  ;;  %v492_v12 = vcombine.high %v490_v60, %v490_v60 }
 0x284   :  { %v358_v8 = vrot.slane %v342_v63, %v334_v50  ;;  %v365_v9 = vrot.slane %v343_v1, %v334_v50  ;;  %v373_v10 = vcombine.high %v351_v2, %v351_v2  ;;  %v344_v11 = vcombine.high %v342_v63, %v342_v63 }
 0x285   :  { %v523_v13 = vcombine.high %v513_v5, %v513_v5  ;;  %v566_v14 = vmul.f32 %v529_v7, %v1273_v3  ;;  %v533_v16 = vrot.slane %v513_v5, %v1271_v57  ;;  %v537_v17 = vrot.slane %v521_v6, %v1271_v57 }
 0x286   :  { %v385_v18 = vrot.slane %v365_v9, %v1271_v57  ;;  %v381_v19 = vrot.slane %v351_v2, %v1271_v57  ;;  %v389_v21 = vrot.slane %v373_v10, %v1271_v57  ;;  %v545_v22 = vrot.slane %v506_v4, %v1271_v57 }
 0x287   :  { %v574_v20 = vsub.f32 1.0, %v566_v14  ;;  %v397_v23 = vrot.slane %v358_v8, %v1271_v57  ;;  %v567_v24 = vmul.f32 %v533_v16, %v1273_v3  ;;  %v568_v25 = vmul.f32 %v537_v17, %v1273_v3 }
 0x288   :  { %v419_v26 = vmul.f32 %v385_v18, %v1277_v15  ;;  %v418_v27 = vmul.f32 %v381_v19, %v1277_v15  ;;  %v520_v28 = vrot.slane %v492_v12, %v334_v50  ;;  %v420_v29 = vmul.f32 %v389_v21, %v1277_v15 }
 0x289   :  { %951 = vlog2.f32 %v574_v20  ;;  %v570_v30 = vmul.f32 %v545_v22, %v1273_v3  ;;  %v575_v31 = vsub.f32 1.0, %v567_v24  ;;  %v576_v32 = vsub.f32 1.0, %v568_v25 }
 0x28a   :  { %v427_v33 = vsub.f32 1.0, %v419_v26  ;;  %v522_v34 = vcombine.high %v506_v4, %v506_v4  ;;  %v426_v35 = vsub.f32 1.0, %v418_v27  ;;  %v422_v36 = vmul.f32 %v397_v23, %v1277_v15 }
 0x28b   :  { %v541_v37 = vrot.slane %v523_v13, %v1271_v57  ;;  %953 = vlog2.f32 %v575_v31  ;;  %v428_v40 = vsub.f32 1.0, %v420_v29  ;;  %v375_v41 = vcombine.high %v365_v9, %v365_v9 }
 0x28c   :  { %v372_v42 = vrot.slane %v344_v11, %v334_v50  ;;  %955 = vlog2.f32 %v576_v32  ;;  %v578_v43 = vsub.f32 1.0, %v570_v30  ;;  %v549_v47 = vrot.slane %v520_v28, %v1271_v57 }
 0x28d   :  { %v569_v45 = vmul.f32 %v541_v37, %v1273_v3  ;;  %957 = vlog2.f32 %v427_v33  ;;  %v393_v48 = vrot.slane %v375_v41, %v1271_v57  ;;  %v430_v49 = vsub.f32 1.0, %v422_v36 }
 0x28e   :  { %959 = vlog2.f32 %v426_v35  ;;  %v374_v51 = vcombine.high %v358_v8, %v358_v8  ;;  %v401_v53 = vrot.slane %v372_v42, %v1271_v57  ;;  %v553_v54 = vrot.slane %v522_v34, %v1271_v57 }
 0x28f   :  { %961 = vlog2.f32 %v428_v40  ;;  %v421_v52 = vmul.f32 %v393_v48, %v1277_v15  ;;  %v577_v50 = vsub.f32 1.0, %v569_v45  ;;  %v571_v55 = vmul.f32 %v549_v47, %v1273_v3 }
 0x290   :  { %963 = vlog2.f32 %v578_v43  ;;  %v524_v56 = vcombine.high %v520_v28, %v520_v28  ;;  %v405_v58 = vrot.slane %v374_v51, %v1271_v57  ;;  %v423_v60 = vmul.f32 %v401_v53, %v1277_v15 }
 0x291   :  { %965 = vlog2.f32 %v430_v49  ;;  %v429_v59 = vsub.f32 1.0, %v421_v52  ;;  %v376_v61 = vcombine.high %v372_v42, %v372_v42  ;;  %v579_v62 = vsub.f32 1.0, %v571_v55 }
 0x292   :  { %967 = vlog2.f32 %v577_v50  ;;  %v572_v63 = vmul.f32 %v553_v54, %v1273_v3  ;;  %v557_v1 = vrot.slane %v524_v56, %v1271_v57  ;;  %v424_v5 = vmul.f32 %v405_v58, %v1277_v15 }
 0x293   :  { %969 = vlog2.f32 %v429_v59  ;;  %v431_v6 = vsub.f32 1.0, %v423_v60  ;;  %v409_v7 = vrot.slane %v376_v61, %v1271_v57 }
 0x294   :  { %971 = vlog2.f32 %v579_v62  ;;  %v580_v10 = vsub.f32 1.0, %v572_v63  ;;  %v573_v11 = vmul.f32 %v557_v1, %v1273_v3  ;;  %v432_v17 = vsub.f32 1.0, %v424_v5  ;;  %v781_v63 = vld [vmem:[#allocation9 + $0x18] sm:$0xff]  ;;  %v780_v1 = vld [vmem:[#allocation9 + $0x10] sm:$0xff] }
 0x295   :  { %973 = vlog2.f32 %v431_v6  ;;  %v425_v57 = vmul.f32 %v409_v7, %v1277_v15  ;;  %922 = vmatpush3.msra.mxu0 %v781_v63 }
 0x296   :  { %v952_v2 = vpop.eup %951  ;;  %975 = vlog2.f32 %v580_v10  ;;  %v581_v3 = vsub.f32 1.0, %v573_v11  ;;  %923 = vmatprep.subr.mxu0 %v1128_v0 }
 0x297   :  { %v583_v4 = vmul.f32 0.6931472, %v952_v2  ;;  %977 = vlog2.f32 %v432_v17  ;;  %v433_v15 = vsub.f32 1.0, %v425_v57  ;;  %v779_v2 = vld [vmem:[#allocation9 + $0x8] sm:$0xff]  ;;  %924 = vmatpush3.msra.mxu0 %v780_v1 }
 0x298   :  { %v954_v8 = vpop.eup %953  ;;  %979 = vlog2.f32 %v581_v3  ;;  %925 = vmatprep.subr.mxu0 %v1128_v0 }
 0x299   :  { %v598_v9 = vsel %vm450_vm10, %v583_v4, 0.0  ;;  %v956_v12 = vpop.eup %955  ;;  %v585_v13 = vmul.f32 0.6931472, %v954_v8  ;;  %981 = vlog2.f32 %v433_v15  ;;  %v778_v4 = vld [vmem:[#allocation9] sm:$0xff]  ;;  %926 = vmatpush3.msra.mxu0 %v779_v2 }
 0x29a   :  { %599 = vadd.xlane.f32.xlu0 %v598_v9  ;;  %v958_v14 = vpop.eup %957  ;;  %v587_v16 = vmul.f32 0.6931472, %v956_v12  ;;  %927 = vmatprep.subr.mxu0 %v1128_v0 }
 0x29b   :  { %v960_v18 = vpop.eup %959  ;;  %v601_v19 = vsel %vm450_vm10, %v585_v13, 0.0  ;;  %v437_v20 = vmul.f32 0.6931472, %v958_v14  ;;  %928 = vmatpush3.msra.mxu0 %v778_v4 }
 0x29c   :  { %v962_v21 = vpop.eup %961  ;;  %602 = vadd.xlane.f32.xlu1 %v601_v19  ;;  %v604_v22 = vsel %vm450_vm10, %v587_v16, 0.0  ;;  %v435_v23 = vmul.f32 0.6931472, %v960_v18 }
 0x29d   :  { %v964_v24 = vpop.eup %963  ;;  %v454_v25 = vsel %vm450_vm10, %v437_v20, 0.0  ;;  %v439_v26 = vmul.f32 0.6931472, %v962_v21 }
 0x29e   :  { %605 = vadd.xlane.f32.xlu0 %v604_v22  ;;  %v966_v27 = vpop.eup %965  ;;  %v451_v28 = vsel %vm450_vm10, %v435_v23, 0.0  ;;  %v591_v29 = vmul.f32 0.6931472, %v964_v24 }
 0x29f   :  { %v968_v30 = vpop.eup %967  ;;  %v457_v31 = vsel %vm450_vm10, %v439_v26, 0.0  ;;  %v443_v32 = vmul.f32 0.6931472, %v966_v27  ;;  %v671_v27 = vand.u32 127, %v332_v44 }
 0x2a0   :  { %455 = vadd.xlane.f32.xlu1 %v454_v25  ;;  %v970_v33 = vpop.eup %969  ;;  %v610_v34 = vsel %vm450_vm10, %v591_v29, 0.0  ;;  %v589_v35 = vmul.f32 0.6931472, %v968_v30 }
 0x2a1   :  { %v972_v36 = vpop.eup %971  ;;  %v463_v37 = vsel %vm450_vm10, %v443_v32, 0.0  ;;  %v441_v40 = vmul.f32 0.6931472, %v970_v33  ;;  %v727_v32 = vadd.s32 4294967288, %v671_v27 }
 0x2a2   :  { %452 = vadd.xlane.f32.xlu0 %v451_v28  ;;  %v974_v41 = vpop.eup %973  ;;  %v607_v42 = vsel %vm450_vm10, %v589_v35, 0.0  ;;  %v593_v43 = vmul.f32 0.6931472, %v972_v36 }
 0x2a3   :  { %v976_v45 = vpop.eup %975  ;;  %v460_v47 = vsel %vm450_vm10, %v441_v40, 0.0  ;;  %v445_v48 = vmul.f32 0.6931472, %v974_v41  ;;  %v730_v44 = vsub.s32 %v727_v32, %v1263_v46 }
 0x2a4   :  { %458 = vadd.xlane.f32.xlu1 %v457_v31  ;;  %v978_v49 = vpop.eup %977  ;;  %v613_v51 = vsel %vm450_vm10, %v593_v43, 0.0  ;;  %v595_v52 = vmul.f32 0.6931472, %v976_v45  ;;  %v674_v45 = vsub.s32 %v671_v27, %v1263_v46 }
 0x2a5   :  { %v980_v53 = vpop.eup %979  ;;  %v466_v54 = vsel %vm450_vm10, %v445_v48, 0.0  ;;  %v447_v50 = vmul.f32 0.6931472, %v978_v49 }
 0x2a6   :  { %611 = vadd.xlane.f32.xlu0 %v610_v34  ;;  %v616_v55 = vsel %vm450_vm10, %v595_v52, 0.0  ;;  %v597_v56 = vmul.f32 0.6931472, %v980_v53  ;;  %v982_v58 = vpop.eup %981 }
 0x2a7   :  { %v469_v59 = vsel %vm450_vm10, %v447_v50, 0.0  ;;  %v449_v61 = vmul.f32 0.6931472, %v982_v58 }
 0x2a8   :  { %464 = vadd.xlane.f32.xlu1 %v463_v37  ;;  %v619_v60 = vsel %vm450_vm10, %v597_v56, 0.0 }
 0x2a9   :  { %v472_v62 = vsel %vm450_vm10, %v449_v61, 0.0 }
 0x2aa   :  { %608 = vadd.xlane.f32.xlu0 %v607_v42 }
 0x2ac   :  { %461 = vadd.xlane.f32.xlu1 %v460_v47 }
 0x2ae   :  { %614 = vadd.xlane.f32.xlu0 %v613_v51 }
 0x2b0   :  { %467 = vadd.xlane.f32.xlu1 %v466_v54 }
 0x2b2   :  { %617 = vadd.xlane.f32.xlu0 %v616_v55 }
 0x2b4   :  { %470 = vadd.xlane.f32.xlu1 %v469_v59 }
 0x2b6   :  { %620 = vadd.xlane.f32.xlu0 %v619_v60 }
 0x2ba   :  { %473 = vadd.xlane.f32.xlu0 %v472_v62 }
 0x2c5   :  { %769 = vrot.lane.b32.xlu1 %v1252_v38, %s1133_s0 }
 0x2d0   :  { %772 = vrot.lane.b32.xlu0 %v1254_v39, %s1134_s26 }
 0x323   :  { %v600_v5 = vpop.xlane.xlu0 %599 }
 0x324   :  { %v638_v11 = vsub.f32 1.0, %v600_v5 }
 0x325   :  { %v603_v6 = vpop.xlane.xlu1 %602 }
 0x326   :  { %v639_v9 = vsub.f32 1.0, %v603_v6 }
 0x327   :  { %v606_v38 = vpop.xlane.xlu0 %605 }
 0x328   :  { %v640_v12 = vsub.f32 1.0, %v606_v38  ;;  %983 = vrcp.f32 %v639_v9 }
 0x329   :  { %v456_v7 = vpop.xlane.xlu1 %455  ;;  %985 = vrcp.f32 %v638_v11 }
 0x32a   :  { %v623_v18 = vsub.f32 1.0, %v456_v7  ;;  %987 = vrcp.f32 %v640_v12 }
 0x32b   :  { %v453_v8 = vpop.xlane.xlu0 %452 }
 0x32c   :  { %v622_v16 = vsub.f32 1.0, %v453_v8 }
 0x32d   :  { %v459_v39 = vpop.xlane.xlu1 %458 }
 0x32e   :  { %v624_v0 = vsub.f32 1.0, %v459_v39 }
 0x32f   :  { %v612_v10 = vpop.xlane.xlu0 %611 }
 0x330   :  { %v642_v22 = vsub.f32 1.0, %v612_v10 }
 0x331   :  { %v465_v13 = vpop.xlane.xlu1 %464 }
 0x332   :  { %v626_v3 = vsub.f32 1.0, %v465_v13 }
 0x333   :  { %v609_v14 = vpop.xlane.xlu0 %608 }
 0x334   :  { %v641_v17 = vsub.f32 1.0, %v609_v14 }
 0x335   :  { %v462_v19 = vpop.xlane.xlu1 %461  ;;  %v984_v30 = vpop.eup %983 }
 0x336   :  { %989 = vrcp.f32 %v641_v17  ;;  %v625_v20 = vsub.f32 1.0, %v462_v19  ;;  %v986_v33 = vpop.eup %985  ;;  %v655_v35 = vsub.f32 1.0, %v984_v30 }
 0x337   :  { %v615_v57 = vpop.xlane.xlu0 %614  ;;  %991 = vrcp.f32 %v622_v16  ;;  %v988_v34 = vpop.eup %987  ;;  %v654_v42 = vsub.f32 1.0, %v986_v33 }
 0x338   :  { %v643_v21 = vsub.f32 1.0, %v615_v57  ;;  %993 = vrcp.f32 %v623_v18  ;;  %v656_v47 = vsub.f32 1.0, %v988_v34  ;;  %v735_v49 = vrot.slane %v655_v35, %v730_v44 }
 0x339   :  { %995 = vrcp.f32 %v624_v0  ;;  %v468_v23 = vpop.xlane.xlu1 %467  ;;  %v731_v50 = vrot.slane %v654_v42, %v730_v44 }
 0x33a   :  { %997 = vrcp.f32 %v625_v20  ;;  %v627_v25 = vsub.f32 1.0, %v468_v23  ;;  %v739_v56 = vrot.slane %v656_v47, %v730_v44 }
 0x33b   :  { %v618_v24 = vpop.xlane.xlu0 %617  ;;  %999 = vrcp.f32 %v643_v21  ;;  %v760_v60 = vsel %vm704_vm11, %v735_v49, %v731_v50 }
 0x33c   :  { %v644_v26 = vsub.f32 1.0, %v618_v24  ;;  %1001 = vrcp.f32 %v642_v22  ;;  %v761_v7 = vsel %vm706_vm12, %v739_v56, %v760_v60 }
 0x33d   :  { %v471_v28 = vpop.xlane.xlu1 %470 }
 0x33e   :  { %1003 = vrcp.f32 %v644_v26  ;;  %v628_v29 = vsub.f32 1.0, %v471_v28 }
 0x33f   :  { %1005 = vrcp.f32 %v626_v3  ;;  %v621_v15 = vpop.xlane.xlu0 %620 }
 0x340   :  { %1007 = vrcp.f32 %v627_v25  ;;  %v645_v31 = vsub.f32 1.0, %v621_v15 }
 0x341   :  { %1009 = vrcp.f32 %v628_v29  ;;  %v770_v27 = vpop.permute.xlu1 %769 }
 0x342   :  { %1011 = vrcp.f32 %v645_v31  ;;  %v876_v31 = vld [vmem:[%s1357_s8] ss:$0 sm:$0xff] }
 0x343   :  { %v474_v36 = vpop.xlane.xlu0 %473  ;;  %v990_v37 = vpop.eup %989 }
 0x344   :  { %v629_v40 = vsub.f32 1.0, %v474_v36  ;;  %v992_v41 = vpop.eup %991  ;;  %v657_v51 = vsub.f32 1.0, %v990_v37 }
 0x345   :  { %v994_v43 = vpop.eup %993  ;;  %v675_v53 = vrot.slane %v992_v41, %v674_v45 }
 0x346   :  { %1013 = vrcp.f32 %v629_v40  ;;  %v996_v48 = vpop.eup %995  ;;  %v679_v58 = vrot.slane %v994_v43, %v674_v45  ;;  %v743_v62 = vrot.slane %v657_v51, %v730_v44 }
 0x347   :  { %v998_v52 = vpop.eup %997  ;;  %v683_v61 = vrot.slane %v996_v48, %v674_v45  ;;  %v773_v15 = vpop.permute.xlu0 %772 }
 0x348   :  { %v1000_v54 = vpop.eup %999  ;;  %v705_v46 = vsel %vm704_vm11, %v679_v58, %v675_v53  ;;  %v687_v1 = vrot.slane %v998_v52, %v674_v45  ;;  %v762_v9 = vsel %vm708_vm13, %v743_v62, %v761_v7 }
 0x349   :  { %v1002_v55 = vpop.eup %1001  ;;  %v659_v2 = vsub.f32 1.0, %v1000_v54  ;;  %v707_v39 = vsel %vm706_vm12, %v683_v61, %v705_v46 }
 0x34a   :  { %v658_v5 = vsub.f32 1.0, %v1002_v55  ;;  %v709_v13 = vsel %vm708_vm13, %v687_v1, %v707_v39 }
 0x34b   :  { %v1004_v59 = vpop.eup %1003  ;;  %v751_v10 = vrot.slane %v659_v2, %v730_v44 }
 0x34c   :  { %v1006_v63 = vpop.eup %1005  ;;  %v660_v6 = vsub.f32 1.0, %v1004_v59  ;;  %v747_v14 = vrot.slane %v658_v5, %v730_v44 }
 0x34d   :  { %v1008_v4 = vpop.eup %1007  ;;  %v691_v16 = vrot.slane %v1006_v63, %v674_v45 }
 0x34e   :  { %v1010_v38 = vpop.eup %1009  ;;  %v695_v11 = vrot.slane %v1008_v4, %v674_v45  ;;  %v755_v17 = vrot.slane %v660_v6, %v730_v44  ;;  %v763_v20 = vsel %vm710_vm14, %v747_v14, %v762_v9 }
 0x34f   :  { %v1012_v8 = vpop.eup %1011  ;;  %v699_v18 = vrot.slane %v1010_v38, %v674_v45  ;;  %v711_v57 = vsel %vm710_vm14, %v691_v16, %v709_v13  ;;  %v764_v21 = vsel %vm712_vm15, %v751_v10, %v763_v20 }
 0x350   :  { %v661_v12 = vsub.f32 1.0, %v1012_v8  ;;  %v713_v23 = vsel %vm712_vm15, %v695_v11, %v711_v57  ;;  %v765_v24 = vsel %vm714_vm0, %v755_v17, %v764_v21 }
 0x351   :  { %v715_v3 = vsel %vm714_vm0, %v699_v18, %v713_v23 }
 0x352   :  { %v759_v0 = vrot.slane %v661_v12, %v730_v44 }
 0x353   :  { %v1014_v19 = vpop.eup %1013 }
 0x354   :  { %v703_v22 = vrot.slane %v1014_v19, %v674_v45  ;;  %v766_v26 = vsel %vm716_vm1, %v759_v0, %v765_v24 }
 0x356   :  { %v717_v25 = vsel %vm716_vm1, %v703_v22, %v715_v3 }
 0x357   :  { %v775_v28 = vsel %vm108_vm3, %v717_v25, %v766_v26 }
 0x358   :  { %v776_v29 = vsel %vm322_vm8, %v775_v28, %v770_v27 }
 0x359   :  { %v777_v30 = vsel %vm324_vm9, %v776_v29, %v773_v15 }
 0x35a   :  { %930 = vmatmul.mubr.msk.f32.vlgmr.msra.gmra.mxu0 %vm450_vm10, %v777_v30 }
 0x41a   :  { %v858_v32 = vpop.f32.mrf.mxu0 }
 0x41b   :  { %v859_v33 = vadd.f32 %v876_v31, %v858_v32 }
 0x41c   :  { %v931_v34 = vpop.f32.mrf.mxu0 }
 0x41d   :  { %863 = vst.msk [vmem:[%s1358_s9] sm:$0xff] %vm862_vm2, %v859_v33 }
 0x41e   :  { %868 = vsyncpa [#allocation3], 1 }
 0x41f   :  { %869 = vsyncpa [#allocation5], 1 }
 0x420   :  { %870 = vsyncpa [#allocation8], 1 }

</bundles_post_ra>
